<compile_context>
chip_gen: v5e
topology: v5e:2x2
jax: 0.10.0
libtpu: 0.0.40
codegen_flags: <defaults>
</compile_context>

<pallas_src>
import functools

import jax
import jax.numpy as jnp
from jax.experimental import pallas as pl
from jax.experimental.pallas import tpu as pltpu

EMBED_DIM = 300


def _round_up(x, m):
    return ((x + m - 1) // m) * m


def _skipgram_kernel(ce_ref, xe_ref, out_ref, *, batch, tb):
    # ce_ref / xe_ref: (tb, d_pad) gathered embedding rows (feature dim zero-padded).
    # out_ref: (1, 128) lane-dense per-tile partial sum of -logsigmoid(dot).
    i = pl.program_id(0)

    c = ce_ref[...].astype(jnp.float32)
    x = xe_ref[...].astype(jnp.float32)

    # One pass of cross-lane reductions per tile: |c|^2, |x|^2, <c, x>.
    cc = jnp.sum(c * c, axis=-1, keepdims=True)  # (tb, 1)
    xx = jnp.sum(x * x, axis=-1, keepdims=True)  # (tb, 1)
    cx = jnp.sum(c * x, axis=-1, keepdims=True)  # (tb, 1)

    # torch.renorm (max_norm=1): row *= 1/(norm + 1e-7) iff norm > 1.  Since renorm is a
    # per-row scalar scale, apply it directly to the dot product instead of the rows.
    c_norm = jnp.sqrt(cc)
    x_norm = jnp.sqrt(xx)
    c_scale = jnp.where(c_norm > 1.0, 1.0 / (c_norm + 1e-7), jnp.float32(1.0))
    x_scale = jnp.where(x_norm > 1.0, 1.0 / (x_norm + 1e-7), jnp.float32(1.0))
    dot = cx * (c_scale * x_scale)  # (tb, 1)

    # logsigmoid(z) = -logaddexp(0, -z)  (numerically stable, runs on the EUP).
    log_sig = -jnp.logaddexp(jnp.float32(0.0), -dot)  # (tb, 1)

    # Mask rows past the true batch size (padded gathered rows are zeros).
    row = jax.lax.broadcasted_iota(jnp.int32, (tb, 1), 0) + i * tb
    term = jnp.where(row < batch, -log_sig, jnp.float32(0.0))

    partial = jnp.sum(term)
    out_ref[...] = jnp.full((1, 128), partial, dtype=jnp.float32)


def skipgram_forward(center_idx, context_idx, emb_center, emb_context, *, tile_batch=None):
    B = center_idx.shape[0]
    V, D = emb_center.shape
    d_pad = _round_up(D, 128)

    if tile_batch is None:
        tile_batch = min(512, _round_up(B, 8))
    tb = _round_up(int(tile_batch), 8)
    b_pad = _round_up(B, tb)
    num_tiles = b_pad // tb

    # Gather only the B needed rows (O(B*D), not O(V*D)); tables stay in their stored
    # dtype (f32 or bf16).  Zero-pad features to a lane multiple and rows to a tile
    # multiple — zeros change neither norms nor dot products, and padded rows are
    # masked out inside the kernel.
    c_rows = jnp.take(emb_center, center_idx.astype(jnp.int32), axis=0)
    x_rows = jnp.take(emb_context, context_idx.astype(jnp.int32), axis=0)
    c_rows = jnp.pad(c_rows, ((0, b_pad - B), (0, d_pad - D)))
    x_rows = jnp.pad(x_rows, ((0, b_pad - B), (0, d_pad - D)))

    kernel = functools.partial(_skipgram_kernel, batch=B, tb=tb)

    partials = pl.pallas_call(
        kernel,
        out_shape=jax.ShapeDtypeStruct((num_tiles, 128), jnp.float32),
        grid=(num_tiles,),
        in_specs=[
            pl.BlockSpec((tb, d_pad), lambda i: (i, 0)),
            pl.BlockSpec((tb, d_pad), lambda i: (i, 0)),
        ],
        out_specs=pl.BlockSpec((1, 128), lambda i: (i, 0)),
        compiler_params=pltpu.CompilerParams(dimension_semantics=("parallel",)),
    )(c_rows, x_rows)

    # Final reduction + single 1/B scaling outside the kernel.
    return jnp.sum(partials[:, 0]) / jnp.float32(B)


def skipgram_reference(center_idx, context_idx, emb_center, emb_context):
    def renorm(rows):
        norm = jnp.sqrt(jnp.sum(rows * rows, axis=-1, keepdims=True))
        return jnp.where(norm > 1.0, rows * (1.0 / (norm + 1e-7)), rows)

    c = renorm(emb_center[center_idx].astype(jnp.float32))
    x = renorm(emb_context[context_idx].astype(jnp.float32))
    add = jnp.sum(c * x, axis=1)
    log_sig = -jnp.logaddexp(0.0, -add)
    return -jnp.mean(log_sig)


if __name__ == "__main__":
    vocab_size = 50
    batch = 8

    key = jax.random.PRNGKey(0)
    k_ce, k_cx, k_ic, k_ix = jax.random.split(key, 4)

    # nn.Embedding default init: weights ~ N(0, 1)
    emb_center = jax.random.normal(k_ce, (vocab_size, EMBED_DIM), dtype=jnp.float32)
    emb_context = jax.random.normal(k_cx, (vocab_size, EMBED_DIM), dtype=jnp.float32)

    center_input = jax.random.randint(k_ic, (batch,), 0, vocab_size, dtype=jnp.int32)
    context_input = jax.random.randint(k_ix, (batch,), 0, vocab_size, dtype=jnp.int32)

    loss = skipgram_forward(center_input, context_input, emb_center, emb_context)
    loss = jax.block_until_ready(loss)
    ref = skipgram_reference(center_input, context_input, emb_center, emb_context)
    assert jnp.allclose(loss, ref, rtol=1e-5, atol=1e-5), (loss, ref)

    # Second config: batch not a multiple of the tile -> exercises multi-tile grid and
    # in-kernel masking of padded rows.
    batch2 = 19
    k2c, k2x = jax.random.split(jax.random.PRNGKey(1))
    ci2 = jax.random.randint(k2c, (batch2,), 0, vocab_size, dtype=jnp.int32)
    xi2 = jax.random.randint(k2x, (batch2,), 0, vocab_size, dtype=jnp.int32)
    loss2 = jax.block_until_ready(
        skipgram_forward(ci2, xi2, emb_center, emb_context, tile_batch=8)
    )
    ref2 = skipgram_reference(ci2, xi2, emb_center, emb_context)
    assert jnp.allclose(loss2, ref2, rtol=1e-5, atol=1e-5), (loss2, ref2)

    print("KERNEL_OK")
</pallas_src>

<mosaic_0001>
module attributes {stable_mosaic.version = 11 : i64} {
  func.func @_skipgram_kernel(%arg0: i32, %arg1: memref<8x384xf32, #tpu.memory_space<vmem>>, %arg2: memref<8x384xf32, #tpu.memory_space<vmem>>, %arg3: memref<1x128xf32, #tpu.memory_space<vmem>>) attributes {dimension_semantics = [#tpu.dimension_semantics<parallel>], iteration_bounds = array<i64: 1>, scalar_prefetch = 0 : i64, scratch_operands = 0 : i64, tpu.core_type = #tpu.core_type<tc>, window_params = [{transform_indices = @transform_0, window_bounds = array<i64: 8, 384>}, {transform_indices = @transform_1, window_bounds = array<i64: 8, 384>}, {transform_indices = @transform_2, window_bounds = array<i64: 1, 128>}]} {
    %c0 = arith.constant 0 : index
    %c0_0 = arith.constant 0 : index
    %0 = vector.load %arg1[%c0, %c0_0] : memref<8x384xf32, #tpu.memory_space<vmem>>, vector<8x384xf32>
    %c0_1 = arith.constant 0 : index
    %c0_2 = arith.constant 0 : index
    %1 = vector.load %arg2[%c0_1, %c0_2] : memref<8x384xf32, #tpu.memory_space<vmem>>, vector<8x384xf32>
    %2 = arith.mulf %0, %0 : vector<8x384xf32>
    %cst = arith.constant dense<0.000000e+00> : vector<8xf32>
    %3 = vector.multi_reduction <add>, %2, %cst [1] : vector<8x384xf32> to vector<8xf32>
    %4 = vector.shape_cast %3 : vector<8xf32> to vector<8x1xf32>
    %5 = arith.mulf %1, %1 : vector<8x384xf32>
    %cst_3 = arith.constant dense<0.000000e+00> : vector<8xf32>
    %6 = vector.multi_reduction <add>, %5, %cst_3 [1] : vector<8x384xf32> to vector<8xf32>
    %7 = vector.shape_cast %6 : vector<8xf32> to vector<8x1xf32>
    %8 = arith.mulf %0, %1 : vector<8x384xf32>
    %cst_4 = arith.constant dense<0.000000e+00> : vector<8xf32>
    %9 = vector.multi_reduction <add>, %8, %cst_4 [1] : vector<8x384xf32> to vector<8xf32>
    %10 = vector.shape_cast %9 : vector<8xf32> to vector<8x1xf32>
    %11 = math.sqrt %4 : vector<8x1xf32>
    %12 = math.sqrt %7 : vector<8x1xf32>
    %cst_5 = arith.constant 1.000000e+00 : f32
    %13 = vector.broadcast %cst_5 : f32 to vector<8x1xf32>
    %14 = arith.cmpf ogt, %11, %13 : vector<8x1xf32>
    %cst_6 = arith.constant 1.000000e-07 : f32
    %15 = vector.broadcast %cst_6 : f32 to vector<8x1xf32>
    %16 = arith.addf %11, %15 : vector<8x1xf32>
    %cst_7 = arith.constant 1.000000e+00 : f32
    %17 = vector.broadcast %cst_7 : f32 to vector<8x1xf32>
    %18 = arith.divf %17, %16 : vector<8x1xf32>
    %cst_8 = arith.constant 1.000000e+00 : f32
    %19 = vector.broadcast %cst_8 : f32 to vector<8x1xf32>
    %20 = arith.select %14, %18, %19 : vector<8x1xi1>, vector<8x1xf32>
    %cst_9 = arith.constant 1.000000e+00 : f32
    %21 = vector.broadcast %cst_9 : f32 to vector<8x1xf32>
    %22 = arith.cmpf ogt, %12, %21 : vector<8x1xf32>
    %cst_10 = arith.constant 1.000000e-07 : f32
    %23 = vector.broadcast %cst_10 : f32 to vector<8x1xf32>
    %24 = arith.addf %12, %23 : vector<8x1xf32>
    %cst_11 = arith.constant 1.000000e+00 : f32
    %25 = vector.broadcast %cst_11 : f32 to vector<8x1xf32>
    %26 = arith.divf %25, %24 : vector<8x1xf32>
    %cst_12 = arith.constant 1.000000e+00 : f32
    %27 = vector.broadcast %cst_12 : f32 to vector<8x1xf32>
    %28 = arith.select %22, %26, %27 : vector<8x1xi1>, vector<8x1xf32>
    %29 = arith.mulf %20, %28 : vector<8x1xf32>
    %30 = arith.mulf %10, %29 : vector<8x1xf32>
    %cst_13 = arith.constant 0.000000e+00 : f32
    %31 = vector.broadcast %cst_13 : f32 to vector<8x1xf32>
    %32 = arith.subf %31, %30 : vector<8x1xf32>
    %cst_14 = arith.constant 0.000000e+00 : f32
    %33 = vector.broadcast %cst_14 : f32 to vector<8x1xf32>
    %34 = arith.maximumf %33, %32 : vector<8x1xf32>
    %35 = vector.broadcast %cst_14 : f32 to vector<8x1xf32>
    %36 = arith.subf %35, %32 : vector<8x1xf32>
    %37 = arith.cmpf one, %36, %36 : vector<8x1xf32>
    %38 = vector.broadcast %cst_14 : f32 to vector<8x1xf32>
    %39 = arith.addf %38, %32 : vector<8x1xf32>
    %40 = math.absf %36 : vector<8x1xf32>
    %cst_15 = arith.constant 0.000000e+00 : f32
    %41 = vector.broadcast %cst_15 : f32 to vector<8x1xf32>
    %42 = arith.subf %41, %40 : vector<8x1xf32>
    %43 = math.exp %42 : vector<8x1xf32>
    %44 = math.log1p %43 : vector<8x1xf32>
    %45 = arith.addf %34, %44 : vector<8x1xf32>
    %46 = arith.select %37, %39, %45 : vector<8x1xi1>, vector<8x1xf32>
    %cst_16 = arith.constant 0.000000e+00 : f32
    %47 = vector.broadcast %cst_16 : f32 to vector<8x1xf32>
    %48 = arith.subf %47, %46 : vector<8x1xf32>
    %49 = tpu.iota {dimensions = array<i32: 0>} : vector<8x1xi32>
    %c8_i32 = arith.constant 8 : i32
    %50 = arith.muli %arg0, %c8_i32 : i32
    %51 = vector.broadcast %50 : i32 to vector<8x1xi32>
    %52 = arith.addi %49, %51 : vector<8x1xi32>
    %c8_i32_17 = arith.constant 8 : i32
    %53 = vector.broadcast %c8_i32_17 : i32 to vector<8x1xi32>
    %54 = arith.cmpi slt, %52, %53 : vector<8x1xi32>
    %cst_18 = arith.constant 0.000000e+00 : f32
    %55 = vector.broadcast %cst_18 : f32 to vector<8x1xf32>
    %56 = arith.subf %55, %48 : vector<8x1xf32>
    %cst_19 = arith.constant 0.000000e+00 : f32
    %57 = vector.broadcast %cst_19 : f32 to vector<8x1xf32>
    %58 = arith.select %54, %56, %57 : vector<8x1xi1>, vector<8x1xf32>
    %59 = vector.shape_cast %58 : vector<8x1xf32> to vector<1x8x1xf32>
    %cst_20 = arith.constant dense<0.000000e+00> : vector<1xf32>
    %60 = vector.multi_reduction <add>, %59, %cst_20 [1, 2] : vector<1x8x1xf32> to vector<1xf32>
    %61 = vector.shape_cast %60 : vector<1xf32> to vector<1x1x1xf32>
    %62 = vector.extract %61[0, 0, 0] : f32 from vector<1x1x1xf32>
    %63 = vector.broadcast %62 : f32 to vector<1x128xf32>
    %c0_21 = arith.constant 0 : index
    %c0_22 = arith.constant 0 : index
    %64 = vector.load %arg3[%c0_21, %c0_22] : memref<1x128xf32, #tpu.memory_space<vmem>>, vector<1x128xf32>
    tpu.vector_store %arg3[%c0_21, %c0_22], %63 {strides = array<i32>} : memref<1x128xf32, #tpu.memory_space<vmem>>, vector<1x128xf32>,
    return
  }
  func.func @transform_0(%arg0: i32) -> (i32, i32) {
    %c0_i32 = arith.constant 0 : i32
    %c0_i32_0 = arith.constant 0 : i32
    return %arg0, %c0_i32 : i32, i32
  }
  func.func @transform_1(%arg0: i32) -> (i32, i32) {
    %c0_i32 = arith.constant 0 : i32
    %c0_i32_0 = arith.constant 0 : i32
    return %arg0, %c0_i32 : i32, i32
  }
  func.func @transform_2(%arg0: i32) -> (i32, i32) {
    %c0_i32 = arith.constant 0 : i32
    %c0_i32_0 = arith.constant 0 : i32
    return %arg0, %c0_i32 : i32, i32
  }
}

</mosaic_0001>

<bundles_post_ra>
// kernel: tpu_custom_call.1
= control target key start
LH: loop header
LB: loop body
LE: loop exit
PB: predicated region body
PF: predicated region fallthrough
CT: control target
= control target key end

     0   :  { %7 = vsyncpa [#allocation3], 0  ;;  %s311_s0 = inlined_call_operand.hbm [shape: f32[8,384], index: 0, kind: input, shape index: {}]   ;;  %s312_s1 = inlined_call_operand.hbm [shape: f32[8,384], index: 1, kind: input, shape index: {}]   ;;  %s313_s2 = inlined_call_operand.hbm [shape: f32[1,128], index: 2, kind: output, shape index: {}]  }
   0x1   :  { %8 = vsyncpa [#allocation6], 0 }
   0x2   :  { %9 = vsyncpa [#allocation4], 0  ;;  %s15_s11 = sshll.u32 %s311_s0, 4  ;;  %s284_s12 = smov [#allocation2]   ;;  %s16_s11 = int_to_ptr.hbm [resolvable:$true] %s15_s11 }
   0x3   :  { %s17_s13 = sshll.u32 %s284_s12, 4  ;;  %s26_s16 = sshll.u32 %s312_s1, 4  ;;  %s18_s13 = int_to_ptr.vmem [resolvable:$true] %s17_s13  ;;  %s27_s16 = int_to_ptr.hbm [resolvable:$true] %s26_s16 }
   0x4   :  { %20 = dma.hbm_to_vmem [thread:$0]  %s16_s11, 384, %s18_s13, [#allocation3]  }
   0x5   :  { %s285_s17 = smov [#allocation5]  }
   0x6   :  { %s28_s18 = sshll.u32 %s285_s17, 4  ;;  %s29_s18 = int_to_ptr.vmem [resolvable:$true] %s28_s18 }
   0x7   :  { %31 = dma.hbm_to_vmem [thread:$0]  %s27_s16, 384, %s29_s18, [#allocation6]  }
   0x8   :  { %278 = dma.done.wait [#allocation3], 384  }
   0x9   :  { %279 = vsyncadd [#allocation3], 4294966912 }
   0xa   :  { %280 = dma.done.wait [#allocation6], 384  }
   0xb   :  { %281 = vsyncadd [#allocation6], 4294966912  ;;  %v40_v0 = vld [vmem:[#allocation2] sm:$0xff]  ;;  %v41_v1 = vld [vmem:[#allocation2 + $0x8] sm:$0xff]  ;;  %s286_s0 = smov [#allocation7]   ;;  %s178_s21 = sshll.u32 %s313_s2, 4  ;;  %s179_s21 = int_to_ptr.hbm [resolvable:$true] %s178_s21 }
   0xc   :  { %v42_v2 = vld [vmem:[#allocation2 + $0x10] sm:$0xff]  ;;  %v46_v3 = vmul.f32 %v40_v0, %v40_v0  ;;  %v47_v4 = vmul.f32 %v41_v1, %v41_v1  ;;  %v43_v6 = vld [vmem:[#allocation5] sm:$0xff]  ;;  %v44_v7 = vld [vmem:[#allocation5 + $0x8] sm:$0xff]  ;;  %s176_s1 = sshll.u32 %s286_s0, 4  ;;  %s177_s1 = int_to_ptr.vmem [resolvable:$true] %s176_s1 }
   0xd   :  { %v48_v5 = vmul.f32 %v42_v2, %v42_v2  ;;  %v45_v8 = vld [vmem:[#allocation5 + $0x10] sm:$0xff]  ;;  %v53_v9 = vmul.f32 %v43_v6, %v43_v6  ;;  %v60_v10 = vmul.f32 %v43_v6, %v40_v0  ;;  %v54_v12 = vmul.f32 %v44_v7, %v44_v7 }
   0xe   :  { %v49_v11 = vadd.f32 %v47_v4, %v46_v3  ;;  %v61_v13 = vmul.f32 %v44_v7, %v41_v1  ;;  %v62_v14 = vmul.f32 %v45_v8, %v42_v2  ;;  %v55_v17 = vmul.f32 %v45_v8, %v45_v8 }
   0xf   :  { %v56_v18 = vadd.f32 %v54_v12, %v53_v9 }
  0x10   :  { %v50_v15 = vadd.f32 %v49_v11, %v48_v5  ;;  %v63_v16 = vadd.f32 %v61_v13, %v60_v10 }
  0x11   :  { %v57_v20 = vadd.f32 %v56_v18, %v55_v17 }
  0x12   :  { %51 = vadd.xlane.f32.xlu0 %v50_v15  ;;  %v64_v19 = vadd.f32 %v63_v16, %v62_v14 }
  0x14   :  { %65 = vadd.xlane.f32.xlu1 %v64_v19 }
  0x1a   :  { %58 = vadd.xlane.f32.xlu0 %v57_v20 }
  0x85   :  { %v52_v21 = vpop.xlane.xlu0 %51 }
  0x86   :  { %194 = vrsqrt.f32 %v52_v21  ;;  %vm74_vm0 = vcmp.eq.f32.partialorder %v52_v21, inf  ;;  %v77_v33 = vand.u32 2147483648, %v52_v21  ;;  %vm76_vm1 = vcmp.eq.f32.partialorder %v52_v21, 0.0 }
  0x87   :  { %v66_v1 = vpop.xlane.xlu1 %65 }
  0x8c   :  { %v195_v22 = vpop.eup %194 }
  0x8d   :  { %v68_v23 = vmul.f32 %v195_v22, %v52_v21  ;;  %v59_v24 = vpop.xlane.xlu0 %58 }
  0x8e   :  { %196 = vrsqrt.f32 %v59_v24  ;;  %vm86_vm2 = vcmp.eq.f32.partialorder %v59_v24, inf  ;;  %v89_v41 = vand.u32 2147483648, %v59_v24  ;;  %vm88_vm3 = vcmp.eq.f32.partialorder %v59_v24, 0.0 }
  0x8f   :  { %v69_v25 = vmul.f32 %v195_v22, %v68_v23 }
  0x91   :  { %v70_v26 = vmul.f32 0.5, %v69_v25 }
  0x93   :  { %v71_v27 = vsub.f32 1.5, %v70_v26 }
  0x94   :  { %v197_v28 = vpop.eup %196 }
  0x95   :  { %v80_v29 = vmul.f32 %v197_v28, %v59_v24  ;;  %v72_v30 = vmul.f32 %v195_v22, %v71_v27 }
  0x97   :  { %v81_v31 = vmul.f32 %v197_v28, %v80_v29  ;;  %v73_v32 = vmul.f32 %v72_v30, %v52_v21 }
  0x99   :  { %v82_v34 = vmul.f32 0.5, %v81_v31  ;;  %v75_v35 = vsel %vm74_vm0, %v52_v21, %v73_v32  ;;  %vm158_vm0 = vcmask 7168  }
  0x9a   :  { %v78_v36 = vsel %vm76_vm1, %v77_v33, %v75_v35 }
  0x9b   :  { %v83_v37 = vsub.f32 1.5, %v82_v34  ;;  %v92_v38 = vadd.f32 1e-07, %v78_v36  ;;  %vm91_vm12 = vcmp.gt.f32.partialorder %v78_v36, 1.0 }
  0x9d   :  { %v84_v39 = vmul.f32 %v197_v28, %v83_v37  ;;  %198 = vrcp.f32 %v92_v38  ;;  %v104_v52 = vand.u32 2147483648, %v92_v38  ;;  %vm98_vm5 = vweird.f32 %v92_v38 }
  0x9e   :  { %v102_v53 = vand.u32 2147483647, %v92_v38 }
  0x9f   :  { %v85_v40 = vmul.f32 %v84_v39, %v59_v24  ;;  %v105_v59 = vor.u32 1.1754944e-38, %v104_v52 }
  0xa0   :  { %vm103_vm8 = vcmp.eq.f32.partialorder %v102_v53, 8.507059e+37 }
  0xa1   :  { %v87_v42 = vsel %vm86_vm2, %v59_v24, %v85_v40 }
  0xa2   :  { %v90_v43 = vsel %vm88_vm3, %v89_v41, %v87_v42 }
  0xa3   :  { %v199_v44 = vpop.eup %198  ;;  %v110_v45 = vadd.f32 1e-07, %v90_v43  ;;  %vm109_vm13 = vcmp.gt.f32.partialorder %v90_v43, 1.0 }
  0xa4   :  { %v94_v46 = vmul.f32 %v199_v44, %v92_v38  ;;  %vm99_vm4 = vweird.f32 %v199_v44 }
  0xa5   :  { %200 = vrcp.f32 %v110_v45  ;;  %vm100_vm6 = vmor %vm98_vm5, %vm99_vm4  ;;  %v122_v55 = vand.u32 2147483648, %v110_v45  ;;  %v120_v58 = vand.u32 2147483647, %v110_v45  ;;  %vm116_vm9 = vweird.f32 %v110_v45 }
  0xa6   :  { %v95_v47 = vsub.f32 1.0, %v94_v46 }
  0xa7   :  { %v123_v62 = vor.u32 1.1754944e-38, %v122_v55  ;;  %vm121_vm11 = vcmp.eq.f32.partialorder %v120_v58, 8.507059e+37 }
  0xa8   :  { %v96_v48 = vmul.f32 %v199_v44, %v95_v47 }
  0xaa   :  { %v97_v50 = vadd.f32 %v199_v44, %v96_v48 }
  0xab   :  { %v201_v49 = vpop.eup %200 }
  0xac   :  { %v112_v51 = vmul.f32 %v201_v49, %v110_v45  ;;  %v101_v56 = vsel %vm100_vm6, %v199_v44, %v97_v50  ;;  %vm117_vm7 = vweird.f32 %v201_v49 }
  0xad   :  { %v106_v61 = vsel %vm103_vm8, %v105_v59, %v101_v56  ;;  %vm118_vm10 = vmor %vm116_vm9, %vm117_vm7 }
  0xae   :  { %v113_v54 = vsub.f32 1.0, %v112_v51  ;;  %v108_v2 = vsel %vm91_vm12, %v106_v61, 1.0 }
  0xb0   :  { %v114_v57 = vmul.f32 %v201_v49, %v113_v54 }
  0xb2   :  { %v115_v60 = vadd.f32 %v201_v49, %v114_v57 }
  0xb4   :  { %v119_v63 = vsel %vm118_vm10, %v201_v49, %v115_v60 }
  0xb5   :  { %v124_v0 = vsel %vm121_vm11, %v123_v62, %v119_v63 }
  0xb6   :  { %v126_v3 = vsel %vm109_vm13, %v124_v0, 1.0 }
  0xb7   :  { %v127_v4 = vmul.f32 %v126_v3, %v108_v2 }
  0xb9   :  { %v128_v5 = vmul.f32 %v127_v4, %v66_v1 }
  0xbb   :  { %v129_v6 = vsub.f32 0.0, %v128_v5 }
  0xbd   :  { %v131_v7 = vsub.f32 0.0, %v129_v6  ;;  %v130_v19 = vmax.f32 %v129_v6, 0.0 }
  0xbf   :  { %v134_v8 = vand.u32 2147483647, %v131_v7  ;;  %vm132_vm15 = vcmp.ne.f32.partialorder %v131_v7, %v131_v7 }
  0xc1   :  { %v135_v9 = vsub.f32 0.0, %v134_v8 }
  0xc3   :  { %v136_v10 = vmul.f32 1.442695, %v135_v9 }
  0xc5   :  { %202 = vpow2.f32 %v136_v10 }
  0xcb   :  { %v203_v11 = vpop.eup %202 }
  0xcc   :  { %v138_v12 = vadd.f32 1.0, %v203_v11  ;;  %v141_v13 = vmul.f32 -0.5, %v203_v11  ;;  %v144_v15 = vand.u32 2147483647, %v203_v11 }
  0xce   :  { %204 = vlog2.f32 %v138_v12  ;;  %v142_v14 = vadd.f32 1.0, %v141_v13  ;;  %vm145_vm14 = vcmp.lt.f32.partialorder %v144_v15, 0.0004427343 }
  0xd0   :  { %v143_v18 = vmul.f32 %v203_v11, %v142_v14 }
  0xd4   :  { %v205_v16 = vpop.eup %204 }
  0xd5   :  { %v140_v17 = vmul.f32 0.6931472, %v205_v16 }
  0xd7   :  { %v146_v20 = vsel %vm145_vm14, %v143_v18, %v140_v17 }
  0xd8   :  { %v147_v21 = vadd.f32 %v146_v20, %v130_v19 }
  0xda   :  { %v148_v22 = vsel %vm132_vm15, %v129_v6, %v147_v21 }
  0xdb   :  { %v149_v23 = vsub.f32 0.0, %v148_v22 }
  0xdd   :  { %v156_v24 = vsub.f32 0.0, %v149_v23 }
  0xdf   :  { %v159_v25 = vsel %vm158_vm0, %v156_v24, 0.0 }
  0xe0   :  { %160 = vadd.xlane.f32.xlu1 %v159_v25 }
 0x153   :  { %v161_v26 = vpop.xlane.xlu1 %160 }
 0x154   :  { %v162_v27 = vrot.slane %v161_v26, 4 }
 0x156   :  { %v163_v28 = vadd.f32 %v162_v27, %v161_v26 }
 0x158   :  { %v164_v29 = vrot.slane %v163_v28, 2 }
 0x15a   :  { %v165_v30 = vadd.f32 %v164_v29, %v163_v28 }
 0x15c   :  { %v166_v31 = vrot.slane %v165_v30, 1 }
 0x15e   :  { %v167_v32 = vadd.f32 %v166_v31, %v165_v30 }
 0x160   :  { %189 = vpush %v167_v32 }
 0x191   :  { %s190_s22 = spop %189 }
 0x192   :  { %v169_v33 = vstv %s190_s22 }
 0x193   :  { %170 = vst [vmem:[#allocation7] sm:$0x1] %v169_v33 }
 0x194   :  { %181 = dma.vmem_to_hbm [thread:$0]  %s177_s1, 16, %s179_s21, [#allocation4]  }
 0x195   :  { %282 = dma.done.wait [#allocation4], 16  }
 0x196   :  { %283 = vsyncadd [#allocation4], 4294967280 }
 0x197   :  { %186 = vsyncpa [#allocation3], 1 }
 0x198   :  { %187 = vsyncpa [#allocation6], 1 }
 0x199   :  { %188 = vsyncpa [#allocation4], 1 }

</bundles_post_ra>
